<compile_context>
chip_gen: v6e
topology: v6e:2x2x1
jax: 0.10.0
libtpu: 0.0.40
codegen_flags: <defaults>
</compile_context>

<pallas_src>
import jax
import jax.numpy as jnp
from jax.experimental import pallas as pl
from jax.experimental.pallas import tpu as pltpu


def _pa_kernel(x_ref, w1_ref, b1_ref, w2_ref, b2_ref, o_ref):
    # x_ref : (1, C, T) VMEM block -- channels on sublanes, spatial on lanes.
    # w1_ref: (C8, C) VMEM (grid-resident), b1_ref / w2_ref: (C8, 1) VMEM,
    # b2_ref: (1,) SMEM scalar.
    x = x_ref[0]                                                     # (C, T)

    # conv1x1 (C -> C//8) on the MXU, f32 accumulation.
    h = jnp.dot(w1_ref[...], x, preferred_element_type=jnp.float32)  # (C8, T)
    h = jnp.maximum(h + b1_ref[...], 0.0)                            # bias + ReLU

    # conv1x1 (C//8 -> 1): tiny sublane reduce (XLU), bias, sigmoid (EUP).
    y = jnp.sum(w2_ref[...] * h, axis=0, keepdims=True) + b2_ref[0]  # (1, T)
    y = jax.nn.sigmoid(y)

    # Pixel attention: scale every channel of each pixel by its attention value.
    o_ref[0] = (x * y).astype(o_ref.dtype)


def _vmem_capacity_bytes():
    try:
        return int(pltpu.get_tpu_info().vmem_capacity_bytes)
    except Exception:
        return 64 * 1024 * 1024        # conservative (v7x-sized) fallback


def pa_layer(x_nchw, w1, b1, w2, b2, *, tile_hw=None, target_block_bytes=None):
    """PALayer forward.

    x_nchw: (N, C, H, W)
    w1:     (C//8, C)  1x1 conv weight (squeezed),  b1: (C//8,)
    w2:     (C//8,)    1x1 conv weight (squeezed),  b2: (1,)
    Returns (N, C, H, W).
    """
    N, C, H, W = x_nchw.shape
    C8 = w1.shape[0]
    HW = H * W

    vmem_cap = _vmem_capacity_bytes()
    if target_block_bytes is None:
        # ~8 MiB blocks on 128-MiB-VMEM chips (v5e/v6e), ~4 MiB on v7x: the
        # double-buffered in+out footprint stays far under the scoped limit.
        target_block_bytes = max(1 << 20, vmem_cap // 16)

    itemsize = jnp.dtype(x_nchw.dtype).itemsize
    if tile_hw is None:
        t = max(128, (target_block_bytes // (itemsize * C)) // 128 * 128)
        hw_ceil = pl.cdiv(HW, 128) * 128
        tile_hw = min(t, hw_ceil)
        # v7x shards 'parallel' grid axes over 2 TensorCores: for a single
        # image make sure the spatial axis still yields >= 2 blocks.
        if N == 1 and tile_hw >= hw_ceil and hw_ceil >= 256:
            tile_hw = pl.cdiv(hw_ceil // 2, 128) * 128

    # Free view: trailing contiguous dims collapse; no pad, no post-slice.
    x3 = x_nchw.reshape(N, C, HW)

    w1c = w1.astype(x_nchw.dtype)                        # MXU operand
    b1c = b1.astype(jnp.float32).reshape(C8, 1)
    w2c = w2.astype(jnp.float32).reshape(C8, 1)
    b2c = jnp.reshape(b2, (1,)).astype(jnp.float32)

    grid = (N, pl.cdiv(HW, tile_hw))                     # ragged last block OK

    out3 = pl.pallas_call(
        _pa_kernel,
        out_shape=jax.ShapeDtypeStruct((N, C, HW), x_nchw.dtype),
        grid_spec=pltpu.PrefetchScalarGridSpec(
            num_scalar_prefetch=0,
            grid=grid,
            in_specs=[
                pl.BlockSpec((1, C, tile_hw), lambda n, j: (n, 0, j)),   # x
                pl.BlockSpec((C8, C), lambda n, j: (0, 0)),              # w1 (resident)
                pl.BlockSpec((C8, 1), lambda n, j: (0, 0)),              # b1 (resident)
                pl.BlockSpec((C8, 1), lambda n, j: (0, 0)),              # w2 (resident)
                pl.BlockSpec(memory_space=pltpu.MemorySpace.SMEM),       # b2 scalar
            ],
            out_specs=pl.BlockSpec((1, C, tile_hw), lambda n, j: (n, 0, j)),
        ),
        compiler_params=pltpu.CompilerParams(
            dimension_semantics=("parallel", "parallel"),
            vmem_limit_bytes=int(vmem_cap * 3) // 4,
        ),
    )(x3, w1c, b1c, w2c, b2c)

    return out3.reshape(N, C, H, W)


def _reference(x, w1, b1, w2, b2):
    # Pure-JAX reference of the PyTorch forward (1x1 convs over the C axis).
    h = jnp.einsum("oc,nchw->nohw", w1, x, precision=jax.lax.Precision.HIGHEST)
    h = jnp.maximum(h + b1[None, :, None, None], 0.0)
    y = jnp.einsum("o,nohw->nhw", w2, h, precision=jax.lax.Precision.HIGHEST)
    y = jax.nn.sigmoid(y[:, None, :, :] + b2.reshape(1, 1, 1, 1))
    return x * y


if __name__ == "__main__":
    key = jax.random.PRNGKey(0)
    k_x, k_w1, k_b1, k_w2, k_b2, k_x2 = jax.random.split(key, 6)

    # Small shapes consistent with PALayer (channel must be >= 8).
    N, C, H, W = 2, 16, 16, 16
    C8 = C // 8

    x = jax.random.normal(k_x, (N, C, H, W), dtype=jnp.float32)

    # Deterministic synthetic parameters (Conv2d 1x1 weights, squeezed).
    w1 = jax.random.normal(k_w1, (C8, C), dtype=jnp.float32) * 0.1   # conv1 weight
    b1 = jax.random.normal(k_b1, (C8,), dtype=jnp.float32) * 0.1     # conv1 bias
    w2 = jax.random.normal(k_w2, (C8,), dtype=jnp.float32) * 0.1     # conv2 weight
    b2 = jax.random.normal(k_b2, (1,), dtype=jnp.float32) * 0.1      # conv2 bias

    out = jax.block_until_ready(pa_layer(x, w1, b1, w2, b2))
    ref = _reference(x, w1, b1, w2, b2)
    assert out.shape == (N, C, H, W)
    # MXU conv1 (f32 accumulation) vs HIGHEST-precision einsum reference.
    assert jnp.allclose(out, ref, atol=1e-3, rtol=1e-3), "mismatch vs reference"

    # Second check: non-tile-multiple spatial extent exercises the ragged
    # (masked) last block path that replaced the host-side pad/slice.
    H2, W2 = 13, 11
    x2 = jax.random.normal(k_x2, (N, C, H2, W2), dtype=jnp.float32)
    out2 = jax.block_until_ready(pa_layer(x2, w1, b1, w2, b2, tile_hw=128))
    ref2 = _reference(x2, w1, b1, w2, b2)
    assert out2.shape == (N, C, H2, W2)
    assert jnp.allclose(out2, ref2, atol=1e-3, rtol=1e-3), "mismatch (ragged)"

    print("KERNEL_OK")
</pallas_src>

<mosaic_0001>
module attributes {stable_mosaic.version = 11 : i64} {
  func.func @_pa_kernel(%arg0: i32, %arg1: i32, %arg2: memref<1x16x256xf32, #tpu.memory_space<vmem>>, %arg3: memref<2x16xf32, #tpu.memory_space<vmem>>, %arg4: memref<2x1xf32, #tpu.memory_space<vmem>>, %arg5: memref<2x1xf32, #tpu.memory_space<vmem>>, %arg6: memref<1xf32, #tpu.memory_space<smem>>, %arg7: memref<1x16x256xf32, #tpu.memory_space<vmem>>) attributes {dimension_semantics = [#tpu.dimension_semantics<parallel>, #tpu.dimension_semantics<parallel>], iteration_bounds = array<i64: 2, 1>, scalar_prefetch = 0 : i64, scratch_operands = 0 : i64, tpu.core_type = #tpu.core_type<tc>, window_params = [{transform_indices = @transform_0, window_bounds = array<i64: 1, 16, 256>}, {pipeline_mode = #tpu.pipeline_mode<synchronous>, transform_indices = @transform_1, window_bounds = array<i64: 2, 16>}, {pipeline_mode = #tpu.pipeline_mode<synchronous>, transform_indices = @transform_2, window_bounds = array<i64: 2, 1>}, {pipeline_mode = #tpu.pipeline_mode<synchronous>, transform_indices = @transform_3, window_bounds = array<i64: 2, 1>}, {transform_indices = @transform_4, window_bounds = array<i64: 1>}, {transform_indices = @transform_5, window_bounds = array<i64: 1, 16, 256>}]} {
    %c0 = arith.constant 0 : index
    %c0_0 = arith.constant 0 : index
    %c0_1 = arith.constant 0 : index
    %0 = vector.load %arg2[%c0, %c0_0, %c0_1] : memref<1x16x256xf32, #tpu.memory_space<vmem>>, vector<1x16x256xf32>
    %1 = vector.shape_cast %0 : vector<1x16x256xf32> to vector<16x256xf32>
    %c0_2 = arith.constant 0 : index
    %c0_3 = arith.constant 0 : index
    %2 = vector.load %arg3[%c0_2, %c0_3] : memref<2x16xf32, #tpu.memory_space<vmem>>, vector<2x16xf32>
    %cst = arith.constant dense<0.000000e+00> : vector<2x256xf32>
    %3 = tpu.matmul %2, %1, %cst {dimension_numbers = #tpu.dot_dimension_numbers<[1], [0], [0], [1], [0, 0, 1, 1], [], []>} : vector<2x16xf32>, vector<16x256xf32>, vector<2x256xf32> -> vector<2x256xf32>
    %c0_4 = arith.constant 0 : index
    %c0_5 = arith.constant 0 : index
    %4 = vector.load %arg4[%c0_4, %c0_5] : memref<2x1xf32, #tpu.memory_space<vmem>>, vector<2x1xf32>
    %5 = vector.broadcast %4 : vector<2x1xf32> to vector<2x256xf32>
    %6 = arith.addf %3, %5 : vector<2x256xf32>
    %cst_6 = arith.constant 0.000000e+00 : f32
    %7 = vector.broadcast %cst_6 : f32 to vector<2x256xf32>
    %8 = arith.maximumf %6, %7 : vector<2x256xf32>
    %c0_7 = arith.constant 0 : index
    %c0_8 = arith.constant 0 : index
    %9 = vector.load %arg5[%c0_7, %c0_8] : memref<2x1xf32, #tpu.memory_space<vmem>>, vector<2x1xf32>
    %10 = vector.broadcast %9 : vector<2x1xf32> to vector<2x256xf32>
    %11 = arith.mulf %10, %8 : vector<2x256xf32>
    %cst_9 = arith.constant dense<0.000000e+00> : vector<256xf32>
    %12 = vector.multi_reduction <add>, %11, %cst_9 [0] : vector<2x256xf32> to vector<256xf32>
    %13 = vector.shape_cast %12 : vector<256xf32> to vector<1x256xf32>
    %c0_10 = arith.constant 0 : index
    %14 = memref.load %arg6[%c0_10] : memref<1xf32, #tpu.memory_space<smem>>
    %15 = vector.broadcast %14 : f32 to vector<1x256xf32>
    %16 = arith.addf %13, %15 : vector<1x256xf32>
    %17 = arith.negf %16 : vector<1x256xf32>
    %18 = math.exp %17 : vector<1x256xf32>
    %cst_11 = arith.constant 1.000000e+00 : f32
    %19 = vector.broadcast %cst_11 : f32 to vector<1x256xf32>
    %20 = arith.addf %19, %18 : vector<1x256xf32>
    %21 = arith.divf %19, %20 : vector<1x256xf32>
    %22 = vector.broadcast %21 : vector<1x256xf32> to vector<16x256xf32>
    %23 = arith.mulf %1, %22 : vector<16x256xf32>
    %c0_12 = arith.constant 0 : index
    %c0_13 = arith.constant 0 : index
    %c0_14 = arith.constant 0 : index
    %24 = vector.load %arg7[%c0_12, %c0_13, %c0_14] : memref<1x16x256xf32, #tpu.memory_space<vmem>>, vector<1x16x256xf32>
    %25 = vector.shape_cast %24 : vector<1x16x256xf32> to vector<16x256xf32>
    %26 = vector.shape_cast %23 : vector<16x256xf32> to vector<1x16x256xf32>
    tpu.vector_store %arg7[%c0_12, %c0_13, %c0_14], %26 {strides = array<i32>} : memref<1x16x256xf32, #tpu.memory_space<vmem>>, vector<1x16x256xf32>,
    return
  }
  func.func @transform_0(%arg0: i32, %arg1: i32) -> (i32, i32, i32) {
    %c0_i32 = arith.constant 0 : i32
    %c0_i32_0 = arith.constant 0 : i32
    return %arg0, %c0_i32, %arg1 : i32, i32, i32
  }
  func.func @transform_1(%arg0: i32, %arg1: i32) -> (i32, i32) {
    %c0_i32 = arith.constant 0 : i32
    %c0_i32_0 = arith.constant 0 : i32
    %c0_i32_1 = arith.constant 0 : i32
    return %c0_i32, %c0_i32_0 : i32, i32
  }
  func.func @transform_2(%arg0: i32, %arg1: i32) -> (i32, i32) {
    %c0_i32 = arith.constant 0 : i32
    %c0_i32_0 = arith.constant 0 : i32
    %c0_i32_1 = arith.constant 0 : i32
    return %c0_i32, %c0_i32_0 : i32, i32
  }
  func.func @transform_3(%arg0: i32, %arg1: i32) -> (i32, i32) {
    %c0_i32 = arith.constant 0 : i32
    %c0_i32_0 = arith.constant 0 : i32
    %c0_i32_1 = arith.constant 0 : i32
    return %c0_i32, %c0_i32_0 : i32, i32
  }
  func.func @transform_4(%arg0: i32, %arg1: i32) -> i32 {
    %c0_i32 = arith.constant 0 : i32
    %c0_i32_0 = arith.constant 0 : i32
    return %c0_i32 : i32
  }
  func.func @transform_5(%arg0: i32, %arg1: i32) -> (i32, i32, i32) {
    %c0_i32 = arith.constant 0 : i32
    %c0_i32_0 = arith.constant 0 : i32
    return %arg0, %c0_i32, %arg1 : i32, i32, i32
  }
}

</mosaic_0001>

<bundles_post_ra>
// kernel: tpu_custom_call.1
= control target key start
LH: loop header
LB: loop body
LE: loop exit
PB: predicated region body
PF: predicated region fallthrough
CT: control target
= control target key end

     0   :  { %s913_s0 = inlined_call_operand.hbm [shape: f32[2,16,256], index: 0, kind: input, shape index: {}]   ;;  %s914_s1 = inlined_call_operand.vmem [shape: f32[2,16], index: 1, kind: input, shape index: {}]   ;;  %s915_s2 = inlined_call_operand.vmem [shape: f32[2,1], index: 2, kind: input, shape index: {}]   ;;  %s916_s3 = inlined_call_operand.vmem [shape: f32[2,1], index: 3, kind: input, shape index: {}]   ;;  %s917_s4 = inlined_call_operand.<no memory space> [shape: f32[1], index: 4, kind: input, shape index: {}]   ;;  %s918_s5 = inlined_call_operand.hbm [shape: f32[2,16,256], index: 5, kind: output, shape index: {}]  }
   0x1   :  { %10 = sst [smem:[#allocation2]] %s917_s4 }
   0x2   :  { %11 = vsyncpa [#allocation4], 0 }
   0x3   :  { %13 = vsyncpa [#allocation4 + $0x1], 0 }
   0x4   :  { %14 = vsyncpa [#allocation5], 0 }
   0x5   :  { %16 = vsyncpa [#allocation5 + $0x1], 0  ;;  %s750_s20 = smov 0   ;;  %s752_s21 = smov 0  }
   0x6   :  { %s754_s22 = smov 0   ;;  %s756_s23 = smov 0  }
   0x7   :  { %s758_s24 = smov 0   ;;  %s760_s25 = smov 0  }
   0x8 LB: > { %s502_s4 = sadd.s32 4294967295, %s707_s25   ;;  %s503_s26 = sadd.s32 4294967294, %s707_s25   ;;  %s707_s25 = sphi %s760_s25, %s22_s25   ;;  %s703_s24 = sphi %s758_s24, %s929_s24   ;;  %s699_s23 = sphi %s756_s23, %s928_s23   ;;  %s695_s22 = sphi %s754_s22, %s927_s22   ;;  %s691_s21 = sphi %s752_s21, %s926_s21   ;;  %s687_s20 = sphi %s750_s20, %s925_s20  }
   0x9   : > { %s34_s27 = sadd.s32 1, %s703_s24  ;;  %s43_s28 = sadd.s32 1, %s695_s22 }
   0xa   : > { %p36_p0 = scmp.ge.s32.totalorder %s34_s27, 2  ;;  %p50_p1 = scmp.ne.s32.totalorder %s695_s22, %s691_s21 }
   0xb   : > { %p51_p2 = scmp.eq.s32.totalorder %s707_s25, 0  ;;  %p56_p3 = scmp.ne.s32.totalorder %s691_s21, %s687_s20 }
   0xc   : > { %s931_s27 = smov (%p36_p0, %s34_s27), 0  ;;  %p57_p5 = scmp.eq.s32.totalorder %s502_s4, 0 }
   0xd   : > { %p791_p4 = por %p51_p2, %p50_p1  ;;  %s38_s30 = ssub.s32 %s703_s24, %s931_s27 }
   0xe   : > { %p166_p6 = scmp.eq.s32.totalorder %s502_s4, 1  ;;  %p41_p7 = scmp.eq.s32.totalorder %s38_s30, 0 }
   0xf   : > { %p797_p8 = por %p57_p5, %p56_p3  ;;  %p172_p10 = scmp.eq.s32.totalorder %s503_s26, 1 }
  0x10   : > { %p801_p9 = por %p166_p6, %p50_p1  ;;  %p534_p13 = scmp.lt.s32.totalorder %s707_s25, 2 }
  0x11   : > { %s806_s8 = scalar_select %p41_p7, %s695_s22, %s43_s28  }
  0x12   : > { %p808_p11 = por %p172_p10, %p56_p3  ;;  %s204_s10 = sand.u32 1, %s695_s22  }
  0x13   : > { %s506_s11 = sshll.u32 %s204_s10, 5  ;;  %s520_s12 = sshll.u32 %s703_s24, 9 }
  0x14   : > { %s216_s15 = scalar_lea.hbm %s913_s0, %s520_s12  ;;  %s208_s16 = scalar_lea.vmem [#allocation3], %s506_s11 }
  0x15   : > { %s217_s17 = sshll.u32 %s208_s16, 4  ;;  %p821_p0 = pnand %p534_p13, %p791_p4  ;;  %s218_s17 = int_to_ptr.vmem [resolvable:$true] %s217_s17 }
  0x16   : > { %p509_p1 = scmp.ge.s32.totalorder %s707_s25, 1  ;;  %s205_s19 = scalar_lea.sflag [#allocation4], %s204_s10 }
  0x17   : > { %p601_p2 = pneg %p821_p0  ;;  %s612_s4 = scalar_lea.vmem %s218_s17, 512 }
  0x18   : > { %p613_p3 = scmp.ne.s32.totalorder %s218_s17, %s612_s4  ;;  %s709_s26 = smov [#allocation3]  }
  0x19   : > { %s617_s28 = sshll.u32 %s709_s26, 4  ;;  %s618_s28 = int_to_ptr.vmem [resolvable:$false] %s617_s28 }
  0x1a   : > { %p615_p5 = pnand %p613_p3, %p601_p2  ;;  %s619_s30 = scalar_lea.vmem %s618_s28, 1024 }
  0x1b   : > { %p620_p7 = scmp.lt.s32.totalorder %s218_s17, %s618_s28  ;;  %p621_p10 = scmp.lt.s32.totalorder %s619_s30, %s612_s4 }
  0x1c   : > { %p616_p6 = pneg %p615_p5 }
  0x1d   : > { %p622_p12 = por %p621_p10, %p620_p7 }
  0x1f   : > { %p623_p4 = pnand %p622_p12, %p616_p6 }
  0x21   : > { %626 = shalt.err (!%p623_p4)
}
  0x22   : > { %s710_s29 = smov 256   ;;  %s711_s10 = smov 16  }
  0x23   : > { %529 = dma.hbm_to_vmem [thread:$0]  (!%p821_p0), %s216_s15, 512, %s218_s17, %s205_s19, %s710_s29, %s710_s29, %s711_s10  }
  0x24   : > { %p225_p13 = scmp.lt.s32.totalorder %s707_s25, 3 }
  0x26   : > { %p226_p2 = pnand %p509_p1, %p225_p13 }
  0x27   : > { %s834_s11 = sand.u32 (!%p226_p2), 1, %s691_s21  }
  0x28   : > { %229 = sbr.rel (%p226_p2) target bundleno = 316 (0x13c), region = 40  ;;  %s510_s12 = sshll.u32 (!%p226_p2), %s834_s11, 5 }
  0x29   : > { %s232_s13 = scalar_lea.sflag (!%p226_p2), [#allocation4], %s834_s11  ;;  %s235_s14 = scalar_lea.vmem (!%p226_p2), [#allocation3], %s510_s12 }
  0x2d   : > { %678 = dma.done.wait (%p797_p8), %s232_s13, 512  }
  0x2e   : > { %680 = vsyncadd (%p797_p8), %s232_s13, 4294966784  ;;  %v712_v0 = vmov 0.0   ;;  %v713_v1 = vmov 0   ;;  %v844_v2 = vld [vmem:[%s235_s14 + $0x18] sm:$0xff]  ;;  %v266_v3 = vld [vmem:[%s235_s14 + $0x10] sm:$0xff]  ;;  %vm275_vm0 = vcmask 130048  }
  0x2f   : > { %343 = vmatprep.mubr.f32.mxu0 %v712_v0  ;;  %590 = vset.pattern.permute.xlu0 %v713_v1  ;;  %v265_v4 = vld [vmem:[%s235_s14 + $0x8] sm:$0xff]  ;;  %v264_v5 = vld [vmem:[%s235_s14] sm:$0xff]  ;;  %vm360_vm1 = vcmask 1041408   ;;  %s375_s4 = sld [smem:[#allocation2]]  ;;  %s521_s26 = sshll.u32 %s699_s23, 9 }
  0x30   : > { %307 = vmatprep.subr.mxu0 %v844_v2  ;;  %v269_v6 = vld [vmem:[%s915_s2] sm:$0x3]  ;;  %s261_s28 = scalar_lea.vmem [#allocation6], %s510_s12  ;;  %s862_s13 = scalar_lea.hbm %s918_s5, %s521_s26 }
  0x31   : > { %308 = vmatpush1.msra.mxu0 %v266_v3  ;;  %v268_v7 = vld [vmem:[%s914_s1] sm:$0x3]  ;;  %272 = vperm.xlu0 %590, %v269_v6   ;;  %s415_s30 = sshll.u32 %s261_s28, 4  ;;  %s400_s23 = scalar_lea.sflag [#allocation5], %s834_s11  ;;  %s864_s30 = int_to_ptr.vmem [resolvable:$true] %s415_s30 }
  0x32   : > { %309 = vmatprep.subr.mxu0 %v265_v4  ;;  %v352_v8 = vld [vmem:[%s916_s3] sm:$0x3]  ;;  %s627_s12 = scalar_lea.vmem %s864_s30, 512  ;;  %s714_s14 = smov [#allocation6]  }
  0x33   : > { %310 = vmatpush1.msra.mxu0 %v264_v5  ;;  %p628_p8 = scmp.ne.s32.totalorder %s864_s30, %s627_s12  ;;  %s631_s15 = sshll.u32 %s714_s14, 4  ;;  %s632_s15 = int_to_ptr.vmem [resolvable:$false] %s631_s15 }
  0x34   : > { %512 = vmatmul.mubr.msk.f32.vlgmr.msra.gmra.mxu0 %vm275_vm0, %v268_v7  ;;  %s633_s16 = scalar_lea.vmem %s632_s15, 1024  ;;  %p634_p1 = scmp.lt.s32.totalorder %s864_s30, %s632_s15 }
  0x35   : > { %355 = vperm.xlu0 %590, %v352_v8   ;;  %v376_v30 = vstv %s375_s4  ;;  %p629_p12 = pnand %p628_p8, %p801_p9  ;;  %p635_p3 = scmp.lt.s32.totalorder %s633_s16, %s627_s12 }
  0x37   : > { %p630_p0 = pneg %p629_p12  ;;  %p636_p5 = por %p635_p3, %p634_p1 }
  0x39   : > { %p637_p6 = pnand %p636_p5, %p630_p0 }
  0xac   : > { %v273_v9 = vpop.permute.xlu0 %272 }
  0xb0   : > { %v356_v15 = vpop.permute.xlu0 %355 }
  0xf4   : > { %v345_v10 = vpop.f32.mrf.mxu0 }
  0xf5   : > { %v346_v11 = vadd.f32 %v345_v10, %v273_v9 }
  0xf6   : > { %v347_v12 = vpop.f32.mrf.mxu0 }
  0xf7   : > { %v350_v13 = vmax.f32 %v346_v11, 0.0  ;;  %v348_v14 = vadd.f32 %v347_v12, %v273_v9 }
  0xf9   : > { %v358_v16 = vmul.f32 %v356_v15, %v350_v13  ;;  %v351_v17 = vmax.f32 %v348_v14, 0.0 }
  0xfb   : > { %v361_v18 = vsel %vm360_vm1, %v358_v16, 0.0  ;;  %v359_v19 = vmul.f32 %v356_v15, %v351_v17 }
  0xfc   : > { %v362_v20 = vrot.slane %v361_v18, 4 }
  0xfd   : > { %v368_v21 = vsel %vm360_vm1, %v359_v19, 0.0 }
  0xfe   : > { %v363_v22 = vadd.f32 %v362_v20, %v361_v18  ;;  %v369_v23 = vrot.slane %v368_v21, 4 }
 0x100   : > { %v364_v24 = vrot.slane %v363_v22, 2  ;;  %v370_v25 = vadd.f32 %v369_v23, %v368_v21 }
 0x102   : > { %v365_v26 = vadd.f32 %v364_v24, %v363_v22  ;;  %v371_v27 = vrot.slane %v370_v25, 2 }
 0x104   : > { %v366_v28 = vrot.slane %v365_v26, 1  ;;  %v372_v29 = vadd.f32 %v371_v27, %v370_v25 }
 0x106   : > { %v367_v31 = vadd.f32 %v366_v28, %v365_v26  ;;  %v373_v32 = vrot.slane %v372_v29, 1 }
 0x108   : > { %v377_v33 = vadd.f32 %v376_v30, %v367_v31  ;;  %v374_v34 = vadd.f32 %v373_v32, %v372_v29 }
 0x10a   : > { %v513_v35 = vmul.f32 -1.442695, %v377_v33  ;;  %v378_v36 = vadd.f32 %v376_v30, %v374_v34 }
 0x10c   : > { %591 = vpow2.f32 %v513_v35  ;;  %v514_v37 = vmul.f32 -1.442695, %v378_v36 }
 0x10e   : > { %593 = vpow2.f32 %v514_v37 }
 0x119   : > { %v592_v38 = vpop.eup %591 }
 0x11a   : > { %v385_v39 = vadd.f32 1.0, %v592_v38 }
 0x11b   : > { %v594_v40 = vpop.eup %593 }
 0x11c   : > { %595 = vrcp.f32 %v385_v39  ;;  %v386_v41 = vadd.f32 1.0, %v594_v40 }
 0x11e   : > { %597 = vrcp.f32 %v386_v41 }
 0x129   : > { %v596_v42 = vpop.eup %595 }
 0x12a   : > { %v391_v43 = vmul.f32 %v596_v42, %v264_v5  ;;  %v393_v44 = vmul.f32 %v596_v42, %v266_v3 }
 0x12b   : > { %v598_v45 = vpop.eup %597 }
 0x12c   : > { %v392_v46 = vmul.f32 %v598_v45, %v265_v4  ;;  %v394_v47 = vmul.f32 %v598_v45, %v844_v2  ;;  %395 = vst [vmem:[%s261_s28] sm:$0xff] %v391_v43  ;;  %397 = vst [vmem:[%s261_s28 + $0x10] sm:$0xff] %v393_v44 }
 0x12e   : > { %396 = vst [vmem:[%s261_s28 + $0x8] sm:$0xff] %v392_v46  ;;  %398 = vst [vmem:[%s261_s28 + $0x18] sm:$0xff] %v394_v47 }
 0x12f   : > { %640 = shalt.err (!%p637_p6)
}
 0x130   : > { %s641_s17 = scalar_lea.hbm %s862_s13, 512  ;;  %s645_s19 = scalar_lea.hbm %s918_s5, 1024 }
 0x131   : > { %p642_p7 = scmp.ne.s32.totalorder %s862_s13, %s641_s17  ;;  %p646_p13 = scmp.lt.s32.totalorder %s862_s13, %s918_s5 }
 0x132   : > { %p647_p2 = scmp.lt.s32.totalorder %s645_s19, %s641_s17 }
 0x133   : > { %p643_p10 = pnand %p642_p7, %p801_p9 }
 0x134   : > { %p648_p8 = por %p647_p2, %p646_p13 }
 0x135   : > { %p644_p4 = pneg %p643_p10 }
 0x137   : > { %p649_p12 = pnand %p648_p8, %p644_p4 }
 0x139   : > { %652 = shalt.err (!%p649_p12)
}
 0x13a   : > { %s715_s28 = smov 256   ;;  %s716_s29 = smov 16  }
 0x13b   : > { %524 = dma.vmem_to_hbm [thread:$0]  (%p801_p9), %s864_s30, 512, %s862_s13, %s400_s23, %s715_s28, %s715_s28, %s716_s29  }
 0x13c PF: > { %s430_s10 = sand.u32 1, %s687_s20   ;;  %p924_p0 = scmp.ge.s32.totalorder %s707_s25, 2 }
 0x13d   : > { %s431_s12 = scalar_lea.sflag [#allocation5], %s430_s10 }
 0x13e   : > { %p531_p1 = pnand %p924_p0, %p808_p11 }
 0x140   : > { %p532_p3 = pneg %p531_p1 }
 0x142   : > { %682 = dma.done.wait (%p532_p3), %s431_s12, 512  }
 0x143   : > { %684 = vsyncadd (%p532_p3), %s431_s12, 4294966784  ;;  %s22_s25 = sadd.s32 1, %s707_s25   ;;  %s925_s20 = smov %s691_s21 }
 0x144   : > { %p19_p5 = scmp.ge.s32.totalorder %s22_s25, 4   ;;  %s926_s21 = smov %s695_s22 }
 0x145   : > { %s927_s22 = smov %s806_s8  ;;  %s928_s23 = smov %s703_s24 }
 0x146   : > { %s929_s24 = smov %s931_s27  ;;  %21 = sbr.rel (!%p19_p5) target bundleno = 8 (0x8), region = 85 }
 0x14b   :  { %436 = vsyncpa [#allocation4], 1 }
 0x14c   :  { %438 = vsyncpa [#allocation4 + $0x1], 1 }
 0x14d   :  { %439 = vsyncpa [#allocation5], 1 }
 0x14e   :  { %441 = vsyncpa [#allocation5 + $0x1], 1 }

</bundles_post_ra>
